<compile_context>
chip_gen: v6e
topology: v6e:2x2x1
jax: 0.10.0
libtpu: 0.0.40
codegen_flags: <defaults>
</compile_context>

<pallas_src>
import math

import jax
import jax.numpy as jnp
from jax.experimental import pallas as pl
from jax.experimental.pallas import tpu as pltpu


def _concat_kernel(*refs):
    """Copy each input row-tile into its static column slice of the output tile."""
    out_ref = refs[-1]
    in_refs = refs[:-1]
    off = 0
    for r in in_refs:
        n = r.shape[-1]
        out_ref[:, off:off + n] = r[...]  # static lane slice -> plain vector stores
        off += n


# Sublane packing (second-to-last dim granularity) per dtype byte width.
_SUBLANE = {1: 32, 2: 16, 4: 8, 8: 8}

# Conservative working-set budget for tile sizing: fits v5e's 16 MiB default
# scoped VMEM and leaves plenty of headroom on v6e (32 MiB) / v7x (64 MiB phys).
_VMEM_BUDGET_BYTES = 12 * 1024 * 1024


def _pick_row_tile(rows: int, total_cols: int, itemsize: int,
                   block_rows: int | None) -> int:
    sublane = _SUBLANE.get(itemsize, 8)
    if block_rows is not None:
        tr = max(1, min(block_rows, rows))
    else:
        # ~2 double-buffered copies of inputs + 2 of output per step:
        #   VMEM ~= 4 * tr * total_cols * itemsize
        tr = _VMEM_BUDGET_BYTES // max(1, 4 * total_cols * itemsize)
        tr = min(tr, 1024)
    if tr >= rows:
        return rows  # full extent: always a legal block dim
    tr = max(sublane, (tr // sublane) * sublane)
    return min(tr, rows)


def concat_fusion(*inputs, dim: int = -1, block_rows: int | None = None):
    """Pallas equivalent of ConcatFusion.forward: torch.cat(inputs, dim)."""
    if not inputs:
        raise RuntimeError("ConcatFusion needs at least one tensor as input")

    ndim = inputs[0].ndim
    axis = dim if dim >= 0 else dim + ndim
    if not 0 <= axis < max(ndim, 1):
        raise ValueError(f"invalid concat dim {dim} for ndim {ndim}")

    lead = inputs[0].shape[:axis]
    trail = inputs[0].shape[axis + 1:]
    rows = math.prod(lead) if lead else 1
    trail_sz = math.prod(trail) if trail else 1

    out_dtype = jnp.result_type(*inputs)
    itemsize = jnp.dtype(out_dtype).itemsize

    axis_sizes = [x.shape[axis] for x in inputs]
    widths = [a * trail_sz for a in axis_sizes]
    total = sum(widths)

    # Flatten to 2-D [rows, width_i]; contiguous reshape, no data movement.
    flat = [x.astype(out_dtype).reshape(rows, w) for x, w in zip(inputs, widths)]

    tr = _pick_row_tile(rows, total, itemsize, block_rows)
    grid = (pl.cdiv(rows, tr),)

    def _in_spec(w):  # bind width explicitly (avoid late-binding pitfalls)
        return pl.BlockSpec((tr, w), lambda i: (i, 0))

    in_specs = [_in_spec(w) for w in widths]
    out_spec = pl.BlockSpec((tr, total), lambda i: (i, 0))

    in_bytes = rows * total * itemsize
    cost = pl.CostEstimate(flops=0, transcendentals=0,
                           bytes_accessed=2 * in_bytes)

    result = pl.pallas_call(
        _concat_kernel,
        out_shape=jax.ShapeDtypeStruct((rows, total), out_dtype),
        grid=grid,
        in_specs=in_specs,
        out_specs=out_spec,
        compiler_params=pltpu.CompilerParams(
            dimension_semantics=("parallel",),
            vmem_limit_bytes=32 * 1024 * 1024,
        ),
        cost_estimate=cost,
    )(*flat)

    out_shape = lead + (sum(axis_sizes),) + trail
    return result.reshape(out_shape)


if __name__ == "__main__":
    key = jax.random.PRNGKey(0)
    k1, k2, k3 = jax.random.split(key, 3)

    # 1) Small 2-D case consistent with the module example (dim=-1).
    x1 = jax.random.normal(k1, (2, 8), dtype=jnp.float32)
    x2 = jax.random.normal(k2, (2, 16), dtype=jnp.float32)
    x3 = jax.random.normal(k3, (2, 8), dtype=jnp.float32)
    out = jax.block_until_ready(concat_fusion(x1, x2, x3, dim=-1))
    ref = jnp.concatenate([x1, x2, x3], axis=-1)
    assert out.shape == (2, 32), out.shape
    assert jnp.array_equal(out, ref), "mismatch vs reference concatenate (dim=-1)"

    # 2) Non-last concat dim (handled via flattening, no transpose).
    y1 = jax.random.normal(k1, (2, 4, 8), dtype=jnp.float32)
    y2 = jax.random.normal(k2, (2, 4, 8), dtype=jnp.float32)
    out2 = jax.block_until_ready(concat_fusion(y1, y2, dim=1))
    ref2 = jnp.concatenate([y1, y2], axis=1)
    assert out2.shape == (2, 8, 8), out2.shape
    assert jnp.array_equal(out2, ref2), "mismatch vs reference concatenate (dim=1)"

    # 3) Tiled path with multiple grid steps and a partial boundary block
    #    (block_rows=8 over 20 rows -> grid of 3, last block partial).
    z1 = jax.random.normal(k1, (20, 128), dtype=jnp.float32)
    z2 = jax.random.normal(k2, (20, 256), dtype=jnp.float32)
    out3 = jax.block_until_ready(concat_fusion(z1, z2, dim=-1, block_rows=8))
    ref3 = jnp.concatenate([z1, z2], axis=-1)
    assert out3.shape == (20, 384), out3.shape
    assert jnp.array_equal(out3, ref3), "mismatch vs reference concatenate (tiled)"

    # 4) Auto-tiled larger case (rows > tile) exercising the pipeline.
    w1 = jax.random.normal(k1, (2048, 128), dtype=jnp.float32)
    w2 = jax.random.normal(k2, (2048, 256), dtype=jnp.float32)
    out4 = jax.block_until_ready(concat_fusion(w1, w2, dim=-1))
    ref4 = jnp.concatenate([w1, w2], axis=-1)
    assert out4.shape == (2048, 384), out4.shape
    assert jnp.array_equal(out4, ref4), "mismatch vs reference concatenate (large)"

    print("KERNEL_OK")
</pallas_src>

<mosaic_0001>
module attributes {stable_mosaic.version = 11 : i64} {
  func.func @_concat_kernel(%arg0: i32, %arg1: memref<2x8xf32, #tpu.memory_space<vmem>>, %arg2: memref<2x16xf32, #tpu.memory_space<vmem>>, %arg3: memref<2x8xf32, #tpu.memory_space<vmem>>, %arg4: memref<2x32xf32, #tpu.memory_space<vmem>>) attributes {dimension_semantics = [#tpu.dimension_semantics<parallel>], iteration_bounds = array<i64: 1>, scalar_prefetch = 0 : i64, scratch_operands = 0 : i64, tpu.core_type = #tpu.core_type<tc>, window_params = [{transform_indices = @transform_0, window_bounds = array<i64: 2, 8>}, {transform_indices = @transform_1, window_bounds = array<i64: 2, 16>}, {transform_indices = @transform_2, window_bounds = array<i64: 2, 8>}, {transform_indices = @transform_3, window_bounds = array<i64: 2, 32>}]} {
    %c0 = arith.constant 0 : index
    %c0_0 = arith.constant 0 : index
    %0 = vector.load %arg1[%c0, %c0_0] : memref<2x8xf32, #tpu.memory_space<vmem>>, vector<2x8xf32>
    %c0_1 = arith.constant 0 : index
    %c0_2 = arith.constant 0 : index
    %1 = vector.load %arg4[%c0_1, %c0_2] : memref<2x32xf32, #tpu.memory_space<vmem>>, vector<2x8xf32>
    tpu.vector_store %arg4[%c0_1, %c0_2], %0 {strides = array<i32>} : memref<2x32xf32, #tpu.memory_space<vmem>>, vector<2x8xf32>,
    %c0_3 = arith.constant 0 : index
    %c0_4 = arith.constant 0 : index
    %2 = vector.load %arg2[%c0_3, %c0_4] : memref<2x16xf32, #tpu.memory_space<vmem>>, vector<2x16xf32>
    %c0_5 = arith.constant 0 : index
    %c8 = arith.constant 8 : index
    %3 = vector.load %arg4[%c0_5, %c8] : memref<2x32xf32, #tpu.memory_space<vmem>>, vector<2x16xf32>
    tpu.vector_store %arg4[%c0_5, %c8], %2 {strides = array<i32>} : memref<2x32xf32, #tpu.memory_space<vmem>>, vector<2x16xf32>,
    %c0_6 = arith.constant 0 : index
    %c0_7 = arith.constant 0 : index
    %4 = vector.load %arg3[%c0_6, %c0_7] : memref<2x8xf32, #tpu.memory_space<vmem>>, vector<2x8xf32>
    %c0_8 = arith.constant 0 : index
    %c24 = arith.constant 24 : index
    %5 = vector.load %arg4[%c0_8, %c24] : memref<2x32xf32, #tpu.memory_space<vmem>>, vector<2x8xf32>
    tpu.vector_store %arg4[%c0_8, %c24], %4 {strides = array<i32>} : memref<2x32xf32, #tpu.memory_space<vmem>>, vector<2x8xf32>,
    return
  }
  func.func @transform_0(%arg0: i32) -> (i32, i32) {
    %c0_i32 = arith.constant 0 : i32
    %c0_i32_0 = arith.constant 0 : i32
    return %arg0, %c0_i32 : i32, i32
  }
  func.func @transform_1(%arg0: i32) -> (i32, i32) {
    %c0_i32 = arith.constant 0 : i32
    %c0_i32_0 = arith.constant 0 : i32
    return %arg0, %c0_i32 : i32, i32
  }
  func.func @transform_2(%arg0: i32) -> (i32, i32) {
    %c0_i32 = arith.constant 0 : i32
    %c0_i32_0 = arith.constant 0 : i32
    return %arg0, %c0_i32 : i32, i32
  }
  func.func @transform_3(%arg0: i32) -> (i32, i32) {
    %c0_i32 = arith.constant 0 : i32
    %c0_i32_0 = arith.constant 0 : i32
    return %arg0, %c0_i32 : i32, i32
  }
}

</mosaic_0001>

<bundles_post_ra>
// kernel: tpu_custom_call.1
= control target key start
LH: loop header
LB: loop body
LE: loop exit
PB: predicated region body
PF: predicated region fallthrough
CT: control target
= control target key end

     0   :  { %8 = vsyncpa [#allocation3], 0  ;;  %s180_s0 = inlined_call_operand.hbm [shape: f32[2,8], index: 0, kind: input, shape index: {}]   ;;  %s181_s1 = inlined_call_operand.hbm [shape: f32[2,16], index: 1, kind: input, shape index: {}]   ;;  %s182_s2 = inlined_call_operand.vmem [shape: f32[2,8], index: 2, kind: input, shape index: {}]   ;;  %s183_s3 = inlined_call_operand.hbm [shape: f32[2,32], index: 3, kind: output, shape index: {}]  }
   0x1   :  { %9 = vsyncpa [#allocation6], 0 }
   0x2   :  { %10 = vsyncpa [#allocation4], 0  ;;  %s143_s12 = smov [#allocation2]   ;;  %s144_s14 = smov [#allocation5]  }
   0x3   :  { %s17_s13 = sshll.u32 %s143_s12, 4  ;;  %s27_s15 = sshll.u32 %s144_s14, 4  ;;  %s18_s13 = int_to_ptr.vmem [resolvable:$true] %s17_s13  ;;  %s28_s15 = int_to_ptr.vmem [resolvable:$true] %s27_s15 }
   0x4   :  { %s85_s16 = scalar_lea.vmem %s18_s13, 32  ;;  %p90_p1 = scmp.lt.s32.totalorder %s18_s13, %s18_s13 }
   0x5   :  { %p86_p0 = scmp.ne.s32.totalorder %s18_s13, %s85_s16  ;;  %p91_p2 = scmp.lt.s32.totalorder %s85_s16, %s85_s16 }
   0x7   :  { %p92_p3 = por %p91_p2, %p90_p1 }
   0x9   :  { %p93_p4 = pnand %p92_p3, %p86_p0 }
   0xb   :  { %96 = shalt.err (!%p93_p4)
}
   0xc   :  { %20 = dma.hbm_to_vmem [thread:$0]  %s180_s0, 32, %s18_s13, [#allocation3]  }
   0xd   :  { %s105_s19 = scalar_lea.vmem %s28_s15, 32  ;;  %p110_p6 = scmp.lt.s32.totalorder %s28_s15, %s28_s15 }
   0xe   :  { %p106_p5 = scmp.ne.s32.totalorder %s28_s15, %s105_s19  ;;  %p111_p7 = scmp.lt.s32.totalorder %s105_s19, %s105_s19 }
  0x10   :  { %p112_p8 = por %p111_p7, %p110_p6 }
  0x12   :  { %p113_p9 = pnand %p112_p8, %p106_p5 }
  0x14   :  { %116 = shalt.err (!%p113_p9)
}
  0x15   :  { %30 = dma.hbm_to_vmem [thread:$0]  %s181_s1, 32, %s28_s15, [#allocation6]  }
  0x16   :  { %137 = dma.done.wait [#allocation3], 32  }
  0x17   :  { %138 = vsyncadd [#allocation3], 4294967264 }
  0x18   :  { %139 = dma.done.wait [#allocation6], 32  }
  0x19   :  { %140 = vsyncadd [#allocation6], 4294967264  ;;  %vm40_vm0 = vcmask 58368   ;;  %v42_v0 = vld [vmem:[#allocation5] sm:$0x3]  ;;  %s145_s22 = smov 8  }
  0x1a   :  { %v39_v1 = vld [vmem:[#allocation2] sm:$0x3]  ;;  %44 = vrot.lane.b32.xlu0 %v42_v0, %s145_s22  ;;  %s146_s24 = smov 24   ;;  %vm47_vm1 = vcmask 189504   ;;  %s147_s25 = smov [#allocation7]   ;;  %vm54_vm2 = vcmask 255168  }
  0x1b   :  { %41 = vst.msk [vmem:[#allocation7] sm:$0x3] %vm40_vm0, %v39_v1  ;;  %v49_v2 = vld [vmem:[%s182_s2] sm:$0x3]  ;;  %s62_s1 = sshll.u32 %s147_s25, 4  ;;  %s63_s1 = int_to_ptr.vmem [resolvable:$true] %s62_s1 }
  0x1c   :  { %s117_s26 = scalar_lea.vmem %s63_s1, 32  ;;  %p122_p11 = scmp.lt.s32.totalorder %s63_s1, %s63_s1 }
  0x1d   :  { %p118_p10 = scmp.ne.s32.totalorder %s63_s1, %s117_s26  ;;  %p123_p12 = scmp.lt.s32.totalorder %s117_s26, %s117_s26 }
  0x1e   :  { %51 = vrot.lane.b32.xlu0 %v49_v2, %s146_s24 }
  0x1f   :  { %p124_p13 = por %p123_p12, %p122_p11 }
  0x21   :  { %p125_p0 = pnand %p124_p13, %p118_p10 }
  0x8c   :  { %v45_v3 = vpop.permute.xlu0 %44 }
  0x8d   :  { %48 = vst.msk [vmem:[#allocation7] sm:$0x3] %vm47_vm1, %v45_v3 }
  0x90   :  { %v52_v4 = vpop.permute.xlu0 %51 }
  0x91   :  { %55 = vst.msk [vmem:[#allocation7] sm:$0x3] %vm54_vm2, %v52_v4 }
  0x92   :  { %128 = shalt.err (!%p125_p0)
}
  0x93   :  { %65 = dma.vmem_to_hbm [thread:$0]  %s63_s1, 32, %s183_s3, [#allocation4]  }
  0x94   :  { %141 = dma.done.wait [#allocation4], 32  }
  0x95   :  { %142 = vsyncadd [#allocation4], 4294967264 }
  0x96   :  { %69 = vsyncpa [#allocation3], 1 }
  0x97   :  { %70 = vsyncpa [#allocation6], 1 }
  0x98   :  { %71 = vsyncpa [#allocation4], 1 }

</bundles_post_ra>
